<compile_context>
chip_gen: v7x
topology: tpu7x:2x2x1
jax: 0.10.0
libtpu: 0.0.40
codegen_flags: <defaults>
</compile_context>

<pallas_src>
import functools

import jax
import jax.numpy as jnp
from jax.experimental import pallas as pl
from jax.experimental.pallas import tpu as pltpu


_COMPUTE_DTYPE = jnp.bfloat16   # MXU-native stream dtype; accumulation stays f32.


def _downsample_kernel(ph_ref, halo_ref, w_ref, b_ref, o_ref, x_ref, *, wh, tm):
    """One (image, M-tile) grid cell of the strided 3x3 conv.

    ph_ref:   (1, 2, 2, C, TM)     main phase block (flat spatial, row stride Wh)
    halo_ref: (1, 2, 2, C, WHB)    next WHB flat elements (tap windows overrun by <= Wh+1)
    w_ref:    (3, 3, C, C)         resident tap weights, laid out (kh, kw, c_out, c_in)
    b_ref:    (C, 1)               resident f32 bias column
    o_ref:    (1, C, TM)           lane-dense output tile
    x_ref:    (2, 2, C, TM + WHB)  VMEM scratch: main block stitched with its halo
    """
    # Stitch the main block and its halo once; every tap is then a static slice of it.
    x_ref[:, :, :, :tm] = ph_ref[0]
    x_ref[:, :, :, tm:] = halo_ref[0]

    c = o_ref.shape[1]
    acc = jnp.zeros((c, tm), jnp.float32)
    for kh in range(3):
        a, dh = kh % 2, kh // 2
        for kw in range(3):
            b, dw = kw % 2, kw // 2
            s = dh * wh + dw                      # static flat offset of this tap
            acc = acc + jnp.dot(
                w_ref[kh, kw, :, :],
                x_ref[a, b, :, s:s + tm],
                preferred_element_type=jnp.float32,
            )
    o_ref[0] = (acc + b_ref[...]).astype(o_ref.dtype)


def _resident_spec(block_shape, index_map):
    """Constant-index (VMEM-resident) operand; single-buffered when supported."""
    try:
        return pl.BlockSpec(block_shape, index_map, pipeline_mode=pl.Buffered(1))
    except Exception:                              # pragma: no cover - older-API fallback
        return pl.BlockSpec(block_shape, index_map)


def _vmem_budget_bytes():
    """Returns (vmem_limit_bytes, sizing budget) per TPU generation."""
    try:
        cap = int(pltpu.get_tpu_info().vmem_capacity_bytes)
    except Exception:
        cap = 64 * 1024 * 1024                     # unknown -> assume smallest (v7x-class)
    if cap <= 80 * 1024 * 1024:                    # v7x-class: 64 MiB per TensorCore
        limit = 48 * 1024 * 1024
    else:                                          # v5e / v6e: 128 MiB physical
        limit = 64 * 1024 * 1024
    return limit, limit - 8 * 1024 * 1024


def _pick_tile_m(lout, whb, c, sbytes, obytes, batch, budget_bytes):
    """Largest multiple-of-whb M tile whose full VMEM working set fits the budget."""
    resident = 9 * c * c * sbytes + 4 * c                    # weight (1 buffer) + bias
    fixed = resident + 3 * 4 * c * whb * sbytes              # 2x halo blocks + scratch halo tail
    per_col = (2 * 4 * c + 4 * c) * sbytes + 2 * c * obytes + 4 * c
    #          ^2x phase block + stitch scratch   ^2x output   ^f32 accumulator
    avail = max(budget_bytes - fixed, per_col * whb)         # never below one whb-wide tile
    tm = int(avail // per_col)
    tm = min(tm, 4096)                                       # 512-2048 is the measured sweet spot
    lout_up = -(-lout // whb) * whb
    tm = min(tm, lout_up)
    if batch == 1 and lout_up >= 2 * whb:
        # keep >= 2 grid cells so both v7x TensorCores get work
        tm = min(tm, (lout_up // whb + 1) // 2 * whb)
    return max(whb, tm // whb * whb)


@jax.jit
def downsample_forward(x, weight, bias):
    """
    x:      (N, C, H, W)  float32, NCHW (PyTorch convention)
    weight: (C, C, 3, 3)  float32, PyTorch Conv2d weight layout (out, in, kh, kw)
    bias:   (C,)          float32
    returns (N, C, Hout, Wout) with Hout = floor((H+1-3)/2)+1, Wout analogous.
    """
    N, C, H, W = x.shape
    Hout = (H + 1 - 3) // 2 + 1
    Wout = (W + 1 - 3) // 2 + 1
    Hh, Wh = Hout + 1, Wout + 1                   # phase extents incl. bottom/right halo
    lout = Hout * Wh                              # per-image flat output length (garbage col incl.)
    whb = 128 * ((Wh + 1 + 127) // 128)           # halo block width (max tap overrun is Wh+1)

    vmem_limit, budget = _vmem_budget_bytes()
    sbytes = jnp.dtype(_COMPUTE_DTYPE).itemsize
    obytes = jnp.dtype(x.dtype).itemsize
    tm = _pick_tile_m(lout, whb, C, sbytes, obytes, N, budget)
    n_blk = -(-lout // tm)
    lpad = n_blk * tm + whb

    # Single fused space-to-depth pass:
    #   ph[n, a, b, c, i*Wh + j] = x_zeropad[n, c, 2i + a, 2j + b]
    x_zp = jnp.pad(x, ((0, 0), (0, 0), (0, 2 * Hh - H), (0, 2 * Wh - W)))
    ph = x_zp.reshape(N, C, Hh, 2, Wh, 2).transpose(0, 3, 5, 1, 2, 4)
    ph = ph.reshape(N, 2, 2, C, Hh * Wh).astype(_COMPUTE_DTYPE)
    ph = jnp.pad(ph, ((0, 0), (0, 0), (0, 0), (0, 0), (0, lpad - Hh * Wh)))

    # (c_out, c_in, kh, kw) -> (kh, kw, c_out, c_in); bias -> f32 column.
    w_taps = jnp.transpose(weight, (2, 3, 0, 1)).astype(_COMPUTE_DTYPE)
    b_col = bias.astype(jnp.float32).reshape(C, 1)

    halo_step = tm // whb
    kernel = functools.partial(_downsample_kernel, wh=Wh, tm=tm)

    cost = pl.CostEstimate(
        flops=2 * N * n_blk * tm * 9 * C * C,
        transcendentals=0,
        bytes_accessed=(N * 4 * C * n_blk * (tm + whb) * sbytes
                        + 9 * C * C * sbytes
                        + N * C * n_blk * tm * obytes),
    )

    out_flat = pl.pallas_call(
        kernel,
        out_shape=jax.ShapeDtypeStruct((N, C, n_blk * tm), x.dtype),
        grid=(N, n_blk),
        in_specs=[
            # main phase block, pipelined over (image, M-tile)
            pl.BlockSpec((1, 2, 2, C, tm), lambda n, t: (n, 0, 0, 0, t)),
            # halo: a second 128-aligned view of the same phase tensor, one tile ahead
            pl.BlockSpec((1, 2, 2, C, whb),
                         lambda n, t: (n, 0, 0, 0, (t + 1) * halo_step)),
            # VMEM-resident, single-buffered weight and bias
            _resident_spec((3, 3, C, C), lambda n, t: (0, 0, 0, 0)),
            _resident_spec((C, 1), lambda n, t: (0, 0)),
        ],
        out_specs=pl.BlockSpec((1, C, tm), lambda n, t: (n, 0, t)),
        scratch_shapes=[pltpu.VMEM((2, 2, C, tm + whb), _COMPUTE_DTYPE)],
        compiler_params=pltpu.CompilerParams(
            dimension_semantics=("parallel", "parallel"),
            vmem_limit_bytes=vmem_limit,
        ),
        cost_estimate=cost,
    )(ph, ph, w_taps, b_col)

    # Drop the per-row garbage column and the tile padding (cheap fused slice; the lane
    # layout / NCHW order of the kernel output is already final).
    out = out_flat[:, :, :lout].reshape(N, C, Hout, Wh)[:, :, :, :Wout]
    return out


if __name__ == "__main__":
    key = jax.random.PRNGKey(0)
    k_x, k_w, k_b = jax.random.split(key, 3)

    N, C, H, W = 2, 4, 16, 16
    x = jax.random.normal(k_x, (N, C, H, W), dtype=jnp.float32)

    # Deterministic synthetic Conv2d(n_channels, n_channels, 3) parameters.
    fan_in = C * 3 * 3
    limit = float(1.0 / (fan_in ** 0.5))
    weight = jax.random.uniform(k_w, (C, C, 3, 3), jnp.float32, -limit, limit)
    bias = jax.random.uniform(k_b, (C,), jnp.float32, -limit, limit)

    out = jax.block_until_ready(downsample_forward(x, weight, bias))

    # Reference: XLA conv with the same pad-right/bottom + stride-2 semantics (f32).
    ref = jax.lax.conv_general_dilated(
        x, weight,
        window_strides=(2, 2),
        padding=((0, 1), (0, 1)),
        dimension_numbers=("NCHW", "OIHW", "NCHW"),
    ) + bias.reshape(1, C, 1, 1)
    ref = jax.block_until_ready(ref)

    assert out.shape == (N, C, 8, 8), out.shape
    max_err = float(jnp.max(jnp.abs(out - ref)))
    # bf16 streams with f32 accumulation -> relaxed tolerance vs the f32 reference.
    assert jnp.allclose(out, ref, atol=5e-2, rtol=5e-2), max_err
    print("KERNEL_OK")
</pallas_src>

<mosaic_0001>
module attributes {stable_mosaic.version = 11 : i64} {
  func.func @_downsample_kernel(%arg0: i32, %arg1: i32, %arg2: memref<1x2x2x4x128xbf16, #tpu.memory_space<vmem>>, %arg3: memref<1x2x2x4x128xbf16, #tpu.memory_space<vmem>>, %arg4: memref<3x3x4x4xbf16, #tpu.memory_space<vmem>>, %arg5: memref<4x1xf32, #tpu.memory_space<vmem>>, %arg6: memref<1x4x128xf32, #tpu.memory_space<vmem>>, %arg7: memref<2x2x4x256xbf16, #tpu.memory_space<vmem>>) attributes {dimension_semantics = [#tpu.dimension_semantics<parallel>, #tpu.dimension_semantics<parallel>], iteration_bounds = array<i64: 2, 1>, scalar_prefetch = 0 : i64, scratch_operands = 1 : i64, tpu.core_type = #tpu.core_type<tc>, window_params = [{transform_indices = @transform_0, window_bounds = array<i64: 1, 2, 2, 4, 128>}, {transform_indices = @transform_1, window_bounds = array<i64: 1, 2, 2, 4, 128>}, {pipeline_mode = #tpu.pipeline_mode<synchronous>, transform_indices = @transform_2, window_bounds = array<i64: 3, 3, 4, 4>}, {pipeline_mode = #tpu.pipeline_mode<synchronous>, transform_indices = @transform_3, window_bounds = array<i64: 4, 1>}, {transform_indices = @transform_4, window_bounds = array<i64: 1, 4, 128>}]} {
    %c0 = arith.constant 0 : index
    %c0_0 = arith.constant 0 : index
    %c0_1 = arith.constant 0 : index
    %c0_2 = arith.constant 0 : index
    %c0_3 = arith.constant 0 : index
    %0 = vector.load %arg2[%c0, %c0_0, %c0_1, %c0_2, %c0_3] : memref<1x2x2x4x128xbf16, #tpu.memory_space<vmem>>, vector<1x2x2x4x128xbf16>
    %1 = vector.shape_cast %0 : vector<1x2x2x4x128xbf16> to vector<2x2x4x128xbf16>
    %c0_4 = arith.constant 0 : index
    %c0_5 = arith.constant 0 : index
    %c0_6 = arith.constant 0 : index
    %c0_7 = arith.constant 0 : index
    %2 = vector.load %arg7[%c0_4, %c0_5, %c0_6, %c0_7] : memref<2x2x4x256xbf16, #tpu.memory_space<vmem>>, vector<2x2x4x128xbf16>
    tpu.vector_store %arg7[%c0_4, %c0_5, %c0_6, %c0_7], %1 {strides = array<i32>} : memref<2x2x4x256xbf16, #tpu.memory_space<vmem>>, vector<2x2x4x128xbf16>,
    %c0_8 = arith.constant 0 : index
    %c0_9 = arith.constant 0 : index
    %c0_10 = arith.constant 0 : index
    %c0_11 = arith.constant 0 : index
    %c0_12 = arith.constant 0 : index
    %3 = vector.load %arg3[%c0_8, %c0_9, %c0_10, %c0_11, %c0_12] : memref<1x2x2x4x128xbf16, #tpu.memory_space<vmem>>, vector<1x2x2x4x128xbf16>
    %4 = vector.shape_cast %3 : vector<1x2x2x4x128xbf16> to vector<2x2x4x128xbf16>
    %c0_13 = arith.constant 0 : index
    %c0_14 = arith.constant 0 : index
    %c0_15 = arith.constant 0 : index
    %c128 = arith.constant 128 : index
    %5 = vector.load %arg7[%c0_13, %c0_14, %c0_15, %c128] : memref<2x2x4x256xbf16, #tpu.memory_space<vmem>>, vector<2x2x4x128xbf16>
    tpu.vector_store %arg7[%c0_13, %c0_14, %c0_15, %c128], %4 {strides = array<i32>} : memref<2x2x4x256xbf16, #tpu.memory_space<vmem>>, vector<2x2x4x128xbf16>,
    %cst = arith.constant 0.000000e+00 : f32
    %6 = vector.broadcast %cst : f32 to vector<4x128xf32>
    %c0_16 = arith.constant 0 : index
    %c0_17 = arith.constant 0 : index
    %c0_18 = arith.constant 0 : index
    %c0_19 = arith.constant 0 : index
    %7 = vector.load %arg4[%c0_16, %c0_17, %c0_18, %c0_19] : memref<3x3x4x4xbf16, #tpu.memory_space<vmem>>, vector<1x1x4x4xbf16>
    %8 = vector.shape_cast %7 : vector<1x1x4x4xbf16> to vector<4x4xbf16>
    %c0_20 = arith.constant 0 : index
    %c0_21 = arith.constant 0 : index
    %c0_22 = arith.constant 0 : index
    %c0_23 = arith.constant 0 : index
    %9 = vector.load %arg7[%c0_20, %c0_21, %c0_22, %c0_23] : memref<2x2x4x256xbf16, #tpu.memory_space<vmem>>, vector<1x1x4x128xbf16>
    %10 = vector.shape_cast %9 : vector<1x1x4x128xbf16> to vector<4x128xbf16>
    %cst_24 = arith.constant dense<0.000000e+00> : vector<4x128xf32>
    %11 = tpu.matmul %8, %10, %cst_24 {dimension_numbers = #tpu.dot_dimension_numbers<[1], [0], [0], [1], [0, 0, 1, 1], [], []>} : vector<4x4xbf16>, vector<4x128xbf16>, vector<4x128xf32> -> vector<4x128xf32>
    %12 = arith.addf %6, %11 : vector<4x128xf32>
    %c0_25 = arith.constant 0 : index
    %c1 = arith.constant 1 : index
    %c0_26 = arith.constant 0 : index
    %c0_27 = arith.constant 0 : index
    %13 = vector.load %arg4[%c0_25, %c1, %c0_26, %c0_27] : memref<3x3x4x4xbf16, #tpu.memory_space<vmem>>, vector<1x1x4x4xbf16>
    %14 = vector.shape_cast %13 : vector<1x1x4x4xbf16> to vector<4x4xbf16>
    %c0_28 = arith.constant 0 : index
    %c1_29 = arith.constant 1 : index
    %c0_30 = arith.constant 0 : index
    %c0_31 = arith.constant 0 : index
    %15 = vector.load %arg7[%c0_28, %c1_29, %c0_30, %c0_31] : memref<2x2x4x256xbf16, #tpu.memory_space<vmem>>, vector<1x1x4x128xbf16>
    %16 = vector.shape_cast %15 : vector<1x1x4x128xbf16> to vector<4x128xbf16>
    %cst_32 = arith.constant dense<0.000000e+00> : vector<4x128xf32>
    %17 = tpu.matmul %14, %16, %cst_32 {dimension_numbers = #tpu.dot_dimension_numbers<[1], [0], [0], [1], [0, 0, 1, 1], [], []>} : vector<4x4xbf16>, vector<4x128xbf16>, vector<4x128xf32> -> vector<4x128xf32>
    %18 = arith.addf %12, %17 : vector<4x128xf32>
    %c0_33 = arith.constant 0 : index
    %c2 = arith.constant 2 : index
    %c0_34 = arith.constant 0 : index
    %c0_35 = arith.constant 0 : index
    %19 = vector.load %arg4[%c0_33, %c2, %c0_34, %c0_35] : memref<3x3x4x4xbf16, #tpu.memory_space<vmem>>, vector<1x1x4x4xbf16>
    %20 = vector.shape_cast %19 : vector<1x1x4x4xbf16> to vector<4x4xbf16>
    %c0_36 = arith.constant 0 : index
    %c0_37 = arith.constant 0 : index
    %c0_38 = arith.constant 0 : index
    %c1_39 = arith.constant 1 : index
    %21 = vector.load %arg7[%c0_36, %c0_37, %c0_38, %c1_39] : memref<2x2x4x256xbf16, #tpu.memory_space<vmem>>, vector<1x1x4x128xbf16>
    %22 = vector.shape_cast %21 : vector<1x1x4x128xbf16> to vector<4x128xbf16>
    %cst_40 = arith.constant dense<0.000000e+00> : vector<4x128xf32>
    %23 = tpu.matmul %20, %22, %cst_40 {dimension_numbers = #tpu.dot_dimension_numbers<[1], [0], [0], [1], [0, 0, 1, 1], [], []>} : vector<4x4xbf16>, vector<4x128xbf16>, vector<4x128xf32> -> vector<4x128xf32>
    %24 = arith.addf %18, %23 : vector<4x128xf32>
    %c1_41 = arith.constant 1 : index
    %c0_42 = arith.constant 0 : index
    %c0_43 = arith.constant 0 : index
    %c0_44 = arith.constant 0 : index
    %25 = vector.load %arg4[%c1_41, %c0_42, %c0_43, %c0_44] : memref<3x3x4x4xbf16, #tpu.memory_space<vmem>>, vector<1x1x4x4xbf16>
    %26 = vector.shape_cast %25 : vector<1x1x4x4xbf16> to vector<4x4xbf16>
    %c1_45 = arith.constant 1 : index
    %c0_46 = arith.constant 0 : index
    %c0_47 = arith.constant 0 : index
    %c0_48 = arith.constant 0 : index
    %27 = vector.load %arg7[%c1_45, %c0_46, %c0_47, %c0_48] : memref<2x2x4x256xbf16, #tpu.memory_space<vmem>>, vector<1x1x4x128xbf16>
    %28 = vector.shape_cast %27 : vector<1x1x4x128xbf16> to vector<4x128xbf16>
    %cst_49 = arith.constant dense<0.000000e+00> : vector<4x128xf32>
    %29 = tpu.matmul %26, %28, %cst_49 {dimension_numbers = #tpu.dot_dimension_numbers<[1], [0], [0], [1], [0, 0, 1, 1], [], []>} : vector<4x4xbf16>, vector<4x128xbf16>, vector<4x128xf32> -> vector<4x128xf32>
    %30 = arith.addf %24, %29 : vector<4x128xf32>
    %c1_50 = arith.constant 1 : index
    %c1_51 = arith.constant 1 : index
    %c0_52 = arith.constant 0 : index
    %c0_53 = arith.constant 0 : index
    %31 = vector.load %arg4[%c1_50, %c1_51, %c0_52, %c0_53] : memref<3x3x4x4xbf16, #tpu.memory_space<vmem>>, vector<1x1x4x4xbf16>
    %32 = vector.shape_cast %31 : vector<1x1x4x4xbf16> to vector<4x4xbf16>
    %c1_54 = arith.constant 1 : index
    %c1_55 = arith.constant 1 : index
    %c0_56 = arith.constant 0 : index
    %c0_57 = arith.constant 0 : index
    %33 = vector.load %arg7[%c1_54, %c1_55, %c0_56, %c0_57] : memref<2x2x4x256xbf16, #tpu.memory_space<vmem>>, vector<1x1x4x128xbf16>
    %34 = vector.shape_cast %33 : vector<1x1x4x128xbf16> to vector<4x128xbf16>
    %cst_58 = arith.constant dense<0.000000e+00> : vector<4x128xf32>
    %35 = tpu.matmul %32, %34, %cst_58 {dimension_numbers = #tpu.dot_dimension_numbers<[1], [0], [0], [1], [0, 0, 1, 1], [], []>} : vector<4x4xbf16>, vector<4x128xbf16>, vector<4x128xf32> -> vector<4x128xf32>
    %36 = arith.addf %30, %35 : vector<4x128xf32>
    %c1_59 = arith.constant 1 : index
    %c2_60 = arith.constant 2 : index
    %c0_61 = arith.constant 0 : index
    %c0_62 = arith.constant 0 : index
    %37 = vector.load %arg4[%c1_59, %c2_60, %c0_61, %c0_62] : memref<3x3x4x4xbf16, #tpu.memory_space<vmem>>, vector<1x1x4x4xbf16>
    %38 = vector.shape_cast %37 : vector<1x1x4x4xbf16> to vector<4x4xbf16>
    %c1_63 = arith.constant 1 : index
    %c0_64 = arith.constant 0 : index
    %c0_65 = arith.constant 0 : index
    %c1_66 = arith.constant 1 : index
    %39 = vector.load %arg7[%c1_63, %c0_64, %c0_65, %c1_66] : memref<2x2x4x256xbf16, #tpu.memory_space<vmem>>, vector<1x1x4x128xbf16>
    %40 = vector.shape_cast %39 : vector<1x1x4x128xbf16> to vector<4x128xbf16>
    %cst_67 = arith.constant dense<0.000000e+00> : vector<4x128xf32>
    %41 = tpu.matmul %38, %40, %cst_67 {dimension_numbers = #tpu.dot_dimension_numbers<[1], [0], [0], [1], [0, 0, 1, 1], [], []>} : vector<4x4xbf16>, vector<4x128xbf16>, vector<4x128xf32> -> vector<4x128xf32>
    %42 = arith.addf %36, %41 : vector<4x128xf32>
    %c2_68 = arith.constant 2 : index
    %c0_69 = arith.constant 0 : index
    %c0_70 = arith.constant 0 : index
    %c0_71 = arith.constant 0 : index
    %43 = vector.load %arg4[%c2_68, %c0_69, %c0_70, %c0_71] : memref<3x3x4x4xbf16, #tpu.memory_space<vmem>>, vector<1x1x4x4xbf16>
    %44 = vector.shape_cast %43 : vector<1x1x4x4xbf16> to vector<4x4xbf16>
    %c0_72 = arith.constant 0 : index
    %c0_73 = arith.constant 0 : index
    %c0_74 = arith.constant 0 : index
    %c9 = arith.constant 9 : index
    %45 = vector.load %arg7[%c0_72, %c0_73, %c0_74, %c9] : memref<2x2x4x256xbf16, #tpu.memory_space<vmem>>, vector<1x1x4x128xbf16>
    %46 = vector.shape_cast %45 : vector<1x1x4x128xbf16> to vector<4x128xbf16>
    %cst_75 = arith.constant dense<0.000000e+00> : vector<4x128xf32>
    %47 = tpu.matmul %44, %46, %cst_75 {dimension_numbers = #tpu.dot_dimension_numbers<[1], [0], [0], [1], [0, 0, 1, 1], [], []>} : vector<4x4xbf16>, vector<4x128xbf16>, vector<4x128xf32> -> vector<4x128xf32>
    %48 = arith.addf %42, %47 : vector<4x128xf32>
    %c2_76 = arith.constant 2 : index
    %c1_77 = arith.constant 1 : index
    %c0_78 = arith.constant 0 : index
    %c0_79 = arith.constant 0 : index
    %49 = vector.load %arg4[%c2_76, %c1_77, %c0_78, %c0_79] : memref<3x3x4x4xbf16, #tpu.memory_space<vmem>>, vector<1x1x4x4xbf16>
    %50 = vector.shape_cast %49 : vector<1x1x4x4xbf16> to vector<4x4xbf16>
    %c0_80 = arith.constant 0 : index
    %c1_81 = arith.constant 1 : index
    %c0_82 = arith.constant 0 : index
    %c9_83 = arith.constant 9 : index
    %51 = vector.load %arg7[%c0_80, %c1_81, %c0_82, %c9_83] : memref<2x2x4x256xbf16, #tpu.memory_space<vmem>>, vector<1x1x4x128xbf16>
    %52 = vector.shape_cast %51 : vector<1x1x4x128xbf16> to vector<4x128xbf16>
    %cst_84 = arith.constant dense<0.000000e+00> : vector<4x128xf32>
    %53 = tpu.matmul %50, %52, %cst_84 {dimension_numbers = #tpu.dot_dimension_numbers<[1], [0], [0], [1], [0, 0, 1, 1], [], []>} : vector<4x4xbf16>, vector<4x128xbf16>, vector<4x128xf32> -> vector<4x128xf32>
    %54 = arith.addf %48, %53 : vector<4x128xf32>
    %c2_85 = arith.constant 2 : index
    %c2_86 = arith.constant 2 : index
    %c0_87 = arith.constant 0 : index
    %c0_88 = arith.constant 0 : index
    %55 = vector.load %arg4[%c2_85, %c2_86, %c0_87, %c0_88] : memref<3x3x4x4xbf16, #tpu.memory_space<vmem>>, vector<1x1x4x4xbf16>
    %56 = vector.shape_cast %55 : vector<1x1x4x4xbf16> to vector<4x4xbf16>
    %c0_89 = arith.constant 0 : index
    %c0_90 = arith.constant 0 : index
    %c0_91 = arith.constant 0 : index
    %c10 = arith.constant 10 : index
    %57 = vector.load %arg7[%c0_89, %c0_90, %c0_91, %c10] : memref<2x2x4x256xbf16, #tpu.memory_space<vmem>>, vector<1x1x4x128xbf16>
    %58 = vector.shape_cast %57 : vector<1x1x4x128xbf16> to vector<4x128xbf16>
    %cst_92 = arith.constant dense<0.000000e+00> : vector<4x128xf32>
    %59 = tpu.matmul %56, %58, %cst_92 {dimension_numbers = #tpu.dot_dimension_numbers<[1], [0], [0], [1], [0, 0, 1, 1], [], []>} : vector<4x4xbf16>, vector<4x128xbf16>, vector<4x128xf32> -> vector<4x128xf32>
    %60 = arith.addf %54, %59 : vector<4x128xf32>
    %c0_93 = arith.constant 0 : index
    %c0_94 = arith.constant 0 : index
    %61 = vector.load %arg5[%c0_93, %c0_94] : memref<4x1xf32, #tpu.memory_space<vmem>>, vector<4x1xf32>
    %62 = vector.broadcast %61 : vector<4x1xf32> to vector<4x128xf32>
    %63 = arith.addf %60, %62 : vector<4x128xf32>
    %c0_95 = arith.constant 0 : index
    %c0_96 = arith.constant 0 : index
    %c0_97 = arith.constant 0 : index
    %64 = vector.load %arg6[%c0_95, %c0_96, %c0_97] : memref<1x4x128xf32, #tpu.memory_space<vmem>>, vector<1x4x128xf32>
    %65 = vector.shape_cast %64 : vector<1x4x128xf32> to vector<4x128xf32>
    %66 = vector.shape_cast %63 : vector<4x128xf32> to vector<1x4x128xf32>
    tpu.vector_store %arg6[%c0_95, %c0_96, %c0_97], %66 {strides = array<i32>} : memref<1x4x128xf32, #tpu.memory_space<vmem>>, vector<1x4x128xf32>,
    return
  }
  func.func @transform_0(%arg0: i32, %arg1: i32) -> (i32, i32, i32, i32, i32) {
    %c0_i32 = arith.constant 0 : i32
    %c0_i32_0 = arith.constant 0 : i32
    %c0_i32_1 = arith.constant 0 : i32
    %c0_i32_2 = arith.constant 0 : i32
    return %arg0, %c0_i32, %c0_i32_0, %c0_i32_1, %arg1 : i32, i32, i32, i32, i32
  }
  func.func @transform_1(%arg0: i32, %arg1: i32) -> (i32, i32, i32, i32, i32) {
    %c1_i32 = arith.constant 1 : i32
    %0 = arith.addi %arg1, %c1_i32 : i32
    %c1_i32_0 = arith.constant 1 : i32
    %1 = arith.muli %0, %c1_i32_0 : i32
    %c0_i32 = arith.constant 0 : i32
    %c0_i32_1 = arith.constant 0 : i32
    %c0_i32_2 = arith.constant 0 : i32
    %c0_i32_3 = arith.constant 0 : i32
    return %arg0, %c0_i32, %c0_i32_1, %c0_i32_2, %1 : i32, i32, i32, i32, i32
  }
  func.func @transform_2(%arg0: i32, %arg1: i32) -> (i32, i32, i32, i32) {
    %c0_i32 = arith.constant 0 : i32
    %c0_i32_0 = arith.constant 0 : i32
    %c0_i32_1 = arith.constant 0 : i32
    %c0_i32_2 = arith.constant 0 : i32
    %c0_i32_3 = arith.constant 0 : i32
    return %c0_i32, %c0_i32_0, %c0_i32_1, %c0_i32_2 : i32, i32, i32, i32
  }
  func.func @transform_3(%arg0: i32, %arg1: i32) -> (i32, i32) {
    %c0_i32 = arith.constant 0 : i32
    %c0_i32_0 = arith.constant 0 : i32
    %c0_i32_1 = arith.constant 0 : i32
    return %c0_i32, %c0_i32_0 : i32, i32
  }
  func.func @transform_4(%arg0: i32, %arg1: i32) -> (i32, i32, i32) {
    %c0_i32 = arith.constant 0 : i32
    %c0_i32_0 = arith.constant 0 : i32
    return %arg0, %c0_i32, %arg1 : i32, i32, i32
  }
}

</mosaic_0001>

<bundles_post_ra>
// kernel: downsample_forward.1
= control target key start
LH: loop header
LB: loop body
LE: loop exit
PB: predicated region body
PF: predicated region fallthrough
CT: control target
= control target key end

     0   :  { %s1238_s15 = smov 0   ;;  %s1240_s16 = smov 0   ;;  %s1392_s0 = inlined_call_operand.vmem [shape: bf16[2,2,2,4,256], index: 0, kind: input, shape index: {}, may-alias: {0,1}]   ;;  %s1393_s1 = inlined_call_operand.vmem [shape: bf16[2,2,2,4,256], index: 1, kind: input, shape index: {}, may-alias: {0,1}]   ;;  %s1394_s2 = inlined_call_operand.vmem [shape: bf16[3,3,4,4], index: 2, kind: input, shape index: {}]   ;;  %s1395_s3 = inlined_call_operand.vmem [shape: f32[4,1], index: 3, kind: input, shape index: {}]   ;;  %s1396_s4 = inlined_call_operand.vmem [shape: f32[2,4,128], index: 4, kind: output, shape index: {}]  }
   0x1   :  { %s1242_s17 = smov 0   ;;  %s1244_s18 = smov 0  }
   0x2   :  { %s1246_s19 = smov 0  }
   0x3 LB: > { %s26_s20 = sadd.s32 1, %s1201_s18  ;;  %p42_p1 = scmp.ne.s32.totalorder %s1193_s16, %s1189_s15  ;;  %s1205_s19 = sphi %s1246_s19, %s14_s19   ;;  %s1201_s18 = sphi %s1244_s18, %s1401_s18   ;;  %s1197_s17 = sphi %s1242_s17, %s1400_s17   ;;  %s1193_s16 = sphi %s1240_s16, %s1399_s16   ;;  %s1189_s15 = sphi %s1238_s15, %s1398_s15  }
   0x4   : > { %p28_p0 = scmp.ge.s32.totalorder %s26_s20, 2  ;;  %p43_p2 = scmp.eq.s32.totalorder %s1205_s19, 0 }
   0x5   : > { %s35_s23 = sadd.s32 1, %s1193_s16  ;;  %p1007_p5 = scmp.ge.s32.totalorder %s1205_s19, 2 }
   0x6   : > { %s1403_s20 = smov (%p28_p0, %s26_s20), 0  ;;  %p1269_p3 = por %p43_p2, %p42_p1 }
   0x7   : > { %s30_s22 = ssub.s32 %s1201_s18, %s1403_s20  ;;  %174 = sbr.rel (%p1007_p5) target bundleno = 28 (0x1c), region = 24 }
   0x8   : > { %p33_p4 = scmp.eq.s32.totalorder %s30_s22, 0 }
   0xa   : > { %s1277_s24 = scalar_select %p33_p4, %s1193_s16, %s35_s23  }
   0xe   : > { %177 = sbr.rel (!%p1269_p3) target bundleno = 21 (0x15), region = 28  ;;  %s179_s25 = sand.u32 (%p1269_p3), 1, %s1193_s16  }
   0xf   : > { %s1046_s26 = sshll.u32 (%p1269_p3), %s1201_s18, 4  ;;  %s1008_s27 = sshll.u32 (%p1269_p3), %s179_s25, 3 }
  0x10   : > { %s185_s30 = scalar_lea.vmem (%p1269_p3), %s1392_s0, %s1046_s26  ;;  %s181_s5 = scalar_lea.vmem (%p1269_p3), [#allocation3], %s1008_s27 }
  0x11   : > { %v201_v0 = vld [vmem:[%s185_s30] sm:$0x3] (%p1269_p3)  ;;  %v203_v1 = vld [vmem:[%s185_s30 + $0x4] sm:$0x3] (%p1269_p3)  ;;  %v205_v2 = vld [vmem:[%s185_s30 + $0x8] sm:$0x3] (%p1269_p3) }
  0x12   : > { %202 = vst [vmem:[%s181_s5] sm:$0x3] (%p1269_p3), %v201_v0  ;;  %204 = vst [vmem:[%s181_s5 + $0x2] sm:$0x3] (%p1269_p3), %v203_v1  ;;  %v207_v3 = vld [vmem:[%s185_s30 + $0xc] sm:$0x3] (%p1269_p3) }
  0x13   : > { %206 = vst [vmem:[%s181_s5 + $0x4] sm:$0x3] (%p1269_p3), %v205_v2  ;;  %208 = vst [vmem:[%s181_s5 + $0x6] sm:$0x3] (%p1269_p3), %v207_v3 }
  0x15 PF: > { %239 = sbr.rel (!%p1269_p3) target bundleno = 28 (0x1c), region = 69  ;;  %s241_s6 = sand.u32 (%p1269_p3), 1, %s1193_s16  }
  0x16   : > { %s1047_s7 = sshll.u32 (%p1269_p3), %s1201_s18, 4  ;;  %s1011_s8 = sshll.u32 (%p1269_p3), %s241_s6, 3 }
  0x17   : > { %s940_s11 = scalar_lea.vmem (%p1269_p3), %s1393_s1, %s1047_s7  ;;  %s243_s12 = scalar_lea.vmem (%p1269_p3), [#allocation4], %s1011_s8 }
  0x18   : > { %v1014_v4 = vld [vmem:[%s940_s11 + $0x2] sm:$0x3] (%p1269_p3)  ;;  %v1015_v5 = vld [vmem:[%s940_s11 + $0x6] sm:$0x3] (%p1269_p3)  ;;  %v1016_v6 = vld [vmem:[%s940_s11 + $0xa] sm:$0x3] (%p1269_p3) }
  0x19   : > { %265 = vst [vmem:[%s243_s12] sm:$0x3] (%p1269_p3), %v1014_v4  ;;  %267 = vst [vmem:[%s243_s12 + $0x2] sm:$0x3] (%p1269_p3), %v1015_v5  ;;  %v1017_v7 = vld [vmem:[%s940_s11 + $0xe] sm:$0x3] (%p1269_p3) }
  0x1a   : > { %269 = vst [vmem:[%s243_s12 + $0x4] sm:$0x3] (%p1269_p3), %v1016_v6  ;;  %271 = vst [vmem:[%s243_s12 + $0x6] sm:$0x3] (%p1269_p3), %v1017_v7 }
  0x1c PF: > { %p1018_p6 = scmp.ge.s32.totalorder %s1205_s19, 1  ;;  %p301_p7 = scmp.lt.s32.totalorder %s1205_s19, 3 }
  0x1e   : > { %p302_p8 = pnand %p1018_p6, %p301_p7 }
  0x1f   : > { %s308_s13 = sand.u32 (!%p302_p8), 1, %s1189_s15   ;;  %v1207_v8 = vmov (!%p302_p8), 0.0   ;;  %vm1208_vm0 = vmmov (!%p302_p8), 0   ;;  %vm381_vm1 = vcmask (!%p302_p8), 1041408   ;;  %s1209_s15 = smov (!%p302_p8), 127   ;;  %vm377_vm2 = vcmask (!%p302_p8), 31744  }
  0x20   : > { %305 = sbr.rel (%p302_p8) target bundleno = 408 (0x198), region = 110  ;;  %s1019_s14 = sshll.u32 (!%p302_p8), %s308_s13, 3  ;;  %1066 = vmatprep.subr.bf16.mxu0 (!%p302_p8), %v1207_v8  ;;  %1072 = vmatprep.subr.bf16.mxu1 (!%p302_p8), %v1207_v8  ;;  %v1022_v24 = vld [vmem:[%s1394_s2 + $0x2] sm:$0x3] (!%p302_p8)  ;;  %v371_v26 = vld [vmem:[%s1394_s2] sm:$0x3] (!%p302_p8) }
  0x21   : > { %1068 = vmatprep.mubr.msk.bf16.mxu0 (!%p302_p8), %vm1208_vm0, %v1207_v8  ;;  %1074 = vmatprep.mubr.msk.bf16.mxu1 (!%p302_p8), %vm1208_vm0, %v1207_v8  ;;  %s310_s21 = scalar_lea.vmem (!%p302_p8), [#allocation3], %s1019_s14  ;;  %s317_s22 = scalar_lea.vmem (!%p302_p8), [#allocation4], %s1019_s14  ;;  %v1028_v30 = vld [vmem:[%s1394_s2 + $0x6] sm:$0x3] (!%p302_p8)  ;;  %v896_v31 = vld [vmem:[%s1395_s3] sm:$0xf] (!%p302_p8) }
  0x22   : > { %v355_v9 = vld [vmem:[%s310_s21] sm:$0x3] (!%p302_p8)  ;;  %v363_v10 = vld [vmem:[%s317_s22] sm:$0x3] (!%p302_p8)  ;;  %v357_v11 = vld [vmem:[%s310_s21 + $0x4] sm:$0x3] (!%p302_p8) }
  0x23   : > { %359 = vst [vmem:[#allocation2] sm:$0x3] (!%p302_p8), %v355_v9  ;;  %367 = vst [vmem:[#allocation2 + $0x2] sm:$0x3] (!%p302_p8), %v363_v10  ;;  %v365_v12 = vld [vmem:[%s317_s22 + $0x4] sm:$0x3] (!%p302_p8) }
  0x24   : > { %v356_v13 = vld [vmem:[%s310_s21 + $0x2] sm:$0x3] (!%p302_p8)  ;;  %361 = vst [vmem:[#allocation2 + $0x8] sm:$0x3] (!%p302_p8), %v357_v11  ;;  %369 = vst [vmem:[#allocation2 + $0xa] sm:$0x3] (!%p302_p8), %v365_v12 }
  0x25   : > { %360 = vst [vmem:[#allocation2 + $0x4] sm:$0x3] (!%p302_p8), %v356_v13  ;;  %v364_v14 = vld [vmem:[%s317_s22 + $0x2] sm:$0x3] (!%p302_p8)  ;;  %v358_v15 = vld [vmem:[%s310_s21 + $0x6] sm:$0x3] (!%p302_p8) }
  0x26   : > { %368 = vst [vmem:[#allocation2 + $0x6] sm:$0x3] (!%p302_p8), %v364_v14  ;;  %362 = vst [vmem:[#allocation2 + $0xc] sm:$0x3] (!%p302_p8), %v358_v15  ;;  %s1210_s28 = smov (!%p302_p8), 119   ;;  %s1211_s5 = smov (!%p302_p8), 118  }
  0x27   : > { %v1212_v32 = vmov 0   ;;  %vm487_vm3 = vcmask 1039360   ;;  %v1025_v41 = vld [vmem:[%s1394_s2 + $0x4] sm:$0x3]  ;;  %v1032_v46 = vld [vmem:[%s1394_s2 + $0xa] sm:$0x3] }
  0x28   : > { %1166 = vset.pattern.permute.xlu0 %v1212_v32  ;;  %vm718_vm4 = vcmask 973824   ;;  %v1030_v51 = vld [vmem:[%s1394_s2 + $0x8] sm:$0x3]  ;;  %v1038_v54 = vld [vmem:[%s1394_s2 + $0xe] sm:$0x3]  ;;  %vm847_vm5 = vcmask 965632  }
  0x29   : > { %v1035_v58 = vld [vmem:[%s1394_s2 + $0xc] sm:$0x3]  ;;  %v1041_v60 = vld [vmem:[%s1394_s2 + $0x10] sm:$0x3]  ;;  %p347_p9 = scmp.lt.s32.totalorder %s1197_s17, 1 }
  0x2a   : > { %v1026_v16 = vld.sshfl [vmem:[#allocation2] sm:$0x33 pattern:$0x76325410] }
  0x2b   : > { %v372_v17 = vld [vmem:[#allocation2] sm:$0x3]  ;;  %483 = vrot.lane.b32.xlu0 %v1026_v16, %s1209_s15  ;;  %v482_v18 = vcombine.high %v1026_v16, %v1026_v16  ;;  %v1033_v19 = vld.sshfl [vmem:[#allocation2 + $0x8] sm:$0x33 pattern:$0x76325410] }
  0x2c   : > { %v376_v20 = vld [vmem:[#allocation2 + $0x4] sm:$0x3]  ;;  %650 = vrot.lane.b32.xlu1 %v1033_v19, %s1209_s15  ;;  %v649_v21 = vcombine.high %v1033_v19, %v1033_v19  ;;  %v429_v23 = vsel %vm381_vm1, %v372_v17, 0  ;;  %v539_v25 = vld [vmem:[#allocation2 + $0x8] sm:$0x3]  ;;  %s1405_s17 = smov (!%p347_p9, %s1197_s17), 1 }
  0x2d   : > { %v383_v22 = vsel %vm381_vm1, %v376_v20, 0  ;;  %1073 = vmatpush3.bf16.msra.mxu1 %v429_v23  ;;  %v544_v27 = vsel %vm381_vm1, %v539_v25, 0  ;;  %v1039_v28 = vld.sshfl [vmem:[#allocation2 + $0x4] sm:$0x33 pattern:$0x76325410] }
  0x2e   : > { %1067 = vmatpush3.bf16.msra.mxu0 %v383_v22  ;;  %1084 = vmatprep.subr.bf16.mxu1 %v1207_v8  ;;  %v778_v29 = vcombine.high %v1039_v28, %v1039_v28  ;;  %v590_v38 = vld [vmem:[#allocation2 + $0xc] sm:$0x3]  ;;  %s1021_s26 = sshll.u32 %s1405_s17, 2 }
  0x2f   : > { %1078 = vmatprep.subr.bf16.mxu0 %v1207_v8  ;;  %485 = vrot.lane.b32.xlu0 %v482_v18, %s1209_s15  ;;  %v595_v43 = vsel %vm381_vm1, %v590_v38, 0  ;;  %s353_s29 = scalar_lea.vmem %s1396_s4, %s1021_s26 }
  0x30   : > { %652 = vrot.lane.b32.xlu1 %v649_v21, %s1209_s15  ;;  %1075 = vmatmul.mubr.msk.bf16.vlgmr.msra.gmra.mrb[0].mxu1 %vm377_vm2, %v371_v26 }
  0x31   : > { %1069 = vmatmul.mubr.msk.bf16.vlgmr.msra.gmra.mrb[0].mxu0 %vm377_vm2, %v1022_v24  ;;  %1085 = vmatpush3.bf16.msra.mxu1 %v544_v27 }
  0x32   : > { %1080 = vmatprep.mubr.msk.bf16.mxu0 %vm1208_vm0, %v1207_v8  ;;  %1086 = vmatprep.mubr.msk.bf16.mxu1 %vm1208_vm0, %v1207_v8 }
  0x33   : > { %714 = vrot.lane.b32.xlu0 %v1026_v16, %s1210_s28  ;;  %1096 = vmatprep.subr.bf16.mxu1 %v1207_v8 }
  0x34   : > { %716 = vrot.lane.b32.xlu1 %v482_v18, %s1210_s28 }
  0x37   : > { %779 = vrot.lane.b32.xlu0 %v1039_v28, %s1210_s28 }
  0x38   : > { %781 = vrot.lane.b32.xlu1 %v778_v29, %s1210_s28  ;;  %1087 = vmatmul.mubr.msk.bf16.vlgmr.msra.gmra.mrb[4].mxu1 %vm377_vm2, %v1028_v30 }
  0x39   : > { %1098 = vmatprep.mubr.msk.bf16.mxu1 %vm1208_vm0, %v1207_v8 }
  0x3b   : > { %843 = vrot.lane.b32.xlu0 %v1026_v16, %s1211_s5 }
  0x3c   : > { %845 = vrot.lane.b32.xlu1 %v482_v18, %s1211_s5 }
  0x3f   : > { %899 = vperm.xlu0 %1166, %v896_v31  }
  0x9d   : > { %v484_v33 = vpop.permute.xlu0 %483 }
  0x9e   : > { %v651_v34 = vpop.permute.xlu1 %650 }
  0xa1   : > { %v486_v35 = vpop.permute.xlu0 %485 }
  0xa2   : > { %v488_v36 = vsel %vm487_vm3, %v484_v33, %v486_v35  ;;  %v653_v37 = vpop.permute.xlu1 %652 }
  0xa3   : > { %v493_v39 = vsel %vm381_vm1, %v488_v36, 0  ;;  %v654_v40 = vsel %vm487_vm3, %v651_v34, %v653_v37 }
  0xa4   : > { %1079 = vmatpush3.bf16.msra.mxu0 %v493_v39  ;;  %v659_v42 = vsel %vm381_vm1, %v654_v40, 0 }
  0xa5   : > { %1090 = vmatprep.subr.bf16.mxu0 %v1207_v8  ;;  %1097 = vmatpush3.bf16.msra.mxu1 %v659_v42  ;;  %v715_v44 = vpop.permute.xlu0 %714 }
  0xa6   : > { %v717_v45 = vpop.permute.xlu1 %716  ;;  %1108 = vmatprep.subr.bf16.mxu1 %v1207_v8 }
  0xa7   : > { %1081 = vmatmul.mubr.msk.bf16.vlgmr.msra.gmra.mrb[4].mxu0 %vm377_vm2, %v1025_v41  ;;  %v719_v48 = vsel %vm718_vm4, %v715_v44, %v717_v45 }
  0xa8   : > { %1091 = vmatpush3.bf16.msra.mxu0 %v595_v43  ;;  %1092 = vmatprep.mubr.msk.bf16.mxu0 %vm1208_vm0, %v1207_v8  ;;  %v724_v53 = vsel %vm381_vm1, %v719_v48, 0 }
  0xa9   : > { %1099 = vmatmul.mubr.msk.bf16.vlgmr.msra.gmra.mrb[8].mxu1 %vm377_vm2, %v1032_v46  ;;  %1102 = vmatprep.subr.bf16.mxu0 %v1207_v8  ;;  %v780_v47 = vpop.permute.xlu0 %779 }
  0xaa   : > { %v782_v49 = vpop.permute.xlu1 %781  ;;  %1110 = vmatprep.mubr.msk.bf16.mxu1 %vm1208_vm0, %v1207_v8 }
  0xab   : > { %v783_v50 = vsel %vm718_vm4, %v780_v47, %v782_v49 }
  0xac   : > { %v788_v52 = vsel %vm381_vm1, %v783_v50, 0 }
  0xad   : > { %1109 = vmatpush3.bf16.msra.mxu1 %v788_v52  ;;  %v844_v56 = vpop.permute.xlu0 %843 }
  0xae   : > { %v846_v55 = vpop.permute.xlu1 %845 }
  0xaf   : > { %1093 = vmatmul.mubr.msk.bf16.vlgmr.msra.gmra.mrb[8].mxu0 %vm377_vm2, %v1030_v51  ;;  %v848_v57 = vsel %vm847_vm5, %v844_v56, %v846_v55 }
  0xb0   : > { %1103 = vmatpush3.bf16.msra.mxu0 %v724_v53  ;;  %1104 = vmatprep.mubr.msk.bf16.mxu0 %vm1208_vm0, %v1207_v8  ;;  %v853_v59 = vsel %vm381_vm1, %v848_v57, 0 }
  0xb1   : > { %1111 = vmatmul.mubr.msk.bf16.vlgmr.msra.gmra.mrb[12].mxu1 %vm377_vm2, %v1038_v54  ;;  %1114 = vmatprep.subr.bf16.mxu0 %v1207_v8 }
  0xb7   : > { %1105 = vmatmul.mubr.msk.bf16.vlgmr.msra.gmra.mrb[12].mxu0 %vm377_vm2, %v1035_v58 }
  0xb8   : > { %1115 = vmatpush3.bf16.msra.mxu0 %v853_v59  ;;  %1116 = vmatprep.mubr.msk.bf16.mxu0 %vm1208_vm0, %v1207_v8 }
  0xbe   : > { %v900_v37 = vpop.permute.xlu0 %899 }
  0xbf   : > { %1117 = vmatmul.mubr.msk.bf16.vlgmr.msra.gmra.mrb[16].mxu0 %vm377_vm2, %v1041_v60 }
 0x103   : > { %v465_v63 = vpop.f32.mrb[0].mxu1 }
 0x104   : > { %v419_v61 = vpop.f32.mrb[0].mxu0  ;;  %v1076_v2 = vpop.f32.mrb[1].mxu1 }
 0x105   : > { %v1070_v62 = vpop.f32.mrb[1].mxu0  ;;  %v466_v1 = vadd.f32 %v465_v63, %v419_v61  ;;  %v468_v4 = vpop.f32.mrb[2].mxu1 }
 0x106   : > { %v422_v0 = vpop.f32.mrb[2].mxu0  ;;  %v1077_v5 = vpop.f32.mrb[3].mxu1 }
 0x107   : > { %v1071_v3 = vpop.f32.mrb[3].mxu0 }
 0x10b   : > { %v580_v6 = vpop.f32.mrb[4].mxu1 }
 0x10c   : > { %v1088_v7 = vpop.f32.mrb[5].mxu1 }
 0x10d   : > { %v583_v9 = vpop.f32.mrb[6].mxu1 }
 0x10e   : > { %v1089_v10 = vpop.f32.mrb[7].mxu1 }
 0x17a   : > { %v529_v8 = vpop.f32.mrb[4].mxu0 }
 0x17b   : > { %v535_v11 = vadd.f32 %v529_v8, %v466_v1  ;;  %v1082_v12 = vpop.f32.mrb[5].mxu0 }
 0x17c   : > { %v532_v13 = vpop.f32.mrb[6].mxu0  ;;  %v695_v14 = vpop.f32.mrb[8].mxu1 }
 0x17d   : > { %v586_v15 = vadd.f32 %v580_v6, %v535_v11  ;;  %v1083_v16 = vpop.f32.mrb[7].mxu0  ;;  %v1100_v17 = vpop.f32.mrb[9].mxu1 }
 0x17e   : > { %v698_v18 = vpop.f32.mrb[10].mxu1 }
 0x17f   : > { %v1101_v19 = vpop.f32.mrb[11].mxu1 }
 0x182   : > { %v631_v20 = vpop.f32.mrb[8].mxu0 }
 0x183   : > { %v637_v21 = vadd.f32 %v631_v20, %v586_v15  ;;  %v1094_v22 = vpop.f32.mrb[9].mxu0 }
 0x184   : > { %v634_v23 = vpop.f32.mrb[10].mxu0  ;;  %v824_v24 = vpop.f32.mrb[12].mxu1 }
 0x185   : > { %v701_v25 = vadd.f32 %v695_v14, %v637_v21  ;;  %v1095_v26 = vpop.f32.mrb[11].mxu0  ;;  %v1112_v27 = vpop.f32.mrb[13].mxu1 }
 0x186   : > { %v827_v28 = vpop.f32.mrb[14].mxu1 }
 0x187   : > { %v1113_v29 = vpop.f32.mrb[15].mxu1 }
 0x18a   : > { %v760_v30 = vpop.f32.mrb[12].mxu0 }
 0x18b   : > { %v766_v31 = vadd.f32 %v760_v30, %v701_v25  ;;  %v1106_v32 = vpop.f32.mrb[13].mxu0 }
 0x18c   : > { %v763_v33 = vpop.f32.mrb[14].mxu0 }
 0x18d   : > { %v830_v34 = vadd.f32 %v824_v24, %v766_v31  ;;  %v1107_v35 = vpop.f32.mrb[15].mxu0 }
 0x192   : > { %v889_v36 = vpop.f32.mrb[16].mxu0 }
 0x193   : > { %v895_v38 = vadd.f32 %v889_v36, %v830_v34  ;;  %v1118_v39 = vpop.f32.mrb[17].mxu0 }
 0x194   : > { %v892_v40 = vpop.f32.mrb[18].mxu0 }
 0x195   : > { %v902_v41 = vadd.f32 %v900_v37, %v895_v38  ;;  %v1119_v42 = vpop.f32.mrb[19].mxu0 }
 0x197   : > { %903 = vst [vmem:[%s353_s29] sm:$0xf] %v902_v41 }
 0x198 PF: > { %s14_s19 = sadd.s32 1, %s1205_s19   ;;  %s1398_s15 = smov %s1193_s16 }
 0x199   : > { %p11_p10 = scmp.ge.s32.totalorder %s14_s19, 4   ;;  %s1399_s16 = smov %s1277_s24 }
 0x19a   : > { %s1400_s17 = smov %s1201_s18  ;;  %s1401_s18 = smov %s1403_s20 }
 0x19b   :  { %13 = sbr.rel (!%p11_p10) target bundleno = 3 (0x3), region = 172 }

</bundles_post_ra>
